<compile_context>
chip_gen: v5e
topology: v5e:2x2
jax: 0.10.0
libtpu: 0.0.40
codegen_flags: <defaults>
</compile_context>

<pallas_src>
import functools
import math

import jax
import jax.numpy as jnp
from jax import lax
from jax.experimental import pallas as pl
from jax.experimental.pallas import tpu as pltpu

PAD_IX = 0  # deterministic choice for encoder.src_embedder.get_pad_ix()
BOS_IX = 1  # deterministic choice for get_bos_ix()   (unused by the hot path)
EOS_IX = 2  # deterministic choice for get_eos_ix()   (unused by the hot path)

_NEG_LARGE = -1.0e30  # "minus infinity" that never produces inf-inf NaNs
_VMEM_LIMIT_BYTES = 32 * 1024 * 1024  # safe on v5e/v6e/v7x; default tiles use ~16 MiB


# -----------------------------------------------------------------------------
# Kernel 1: masked (ignore_index) cross entropy with online logsumexp
# -----------------------------------------------------------------------------
def _masked_xent_kernel(logits_ref, targets_ref, loss_out_ref, count_out_ref,
                        m_ref, l_ref, t_ref, *,
                        pad_ix, n_rows, vocab, tile_n, tile_v):
    """grid = (row_tiles [parallel], vocab_tiles [arbitrary, reduction]).

    Per row tile the running max / exp-sum / target-logit live in VMEM scratch;
    the per-tile loss sum and valid-token count are emitted once, lane-dense,
    at the last vocab tile.
    """
    i = pl.program_id(0)                 # row-tile index      (parallel)
    j = pl.program_id(1)                 # vocab-tile index    (reduction)
    n_vocab_tiles = pl.num_programs(1)

    neg = jnp.float32(_NEG_LARGE)

    @pl.when(j == 0)
    def _():
        m_ref[...] = jnp.full_like(m_ref, neg)
        l_ref[...] = jnp.zeros_like(l_ref)
        t_ref[...] = jnp.zeros_like(t_ref)

    logits = logits_ref[...].astype(jnp.float32)          # (tile_n, tile_v)
    tgt = targets_ref[...]                                # (tile_n, 1) int32

    col_ids = lax.broadcasted_iota(jnp.int32, (tile_n, tile_v), 1)
    if vocab % tile_v != 0:
        # mask the vocab tail of the last (partial) vocab tile
        in_cols = (col_ids + j * tile_v) < vocab
        logits = jnp.where(in_cols, logits, neg)

    # ---- online logsumexp update --------------------------------------------
    m_prev = m_ref[...]
    l_prev = l_ref[...]
    m_cur = jnp.max(logits, axis=-1, keepdims=True)       # (tile_n, 1)
    m_new = jnp.maximum(m_prev, m_cur)
    p = jnp.exp(logits - m_new)
    l_ref[...] = l_prev * jnp.exp(m_prev - m_new) + jnp.sum(p, axis=-1, keepdims=True)
    m_ref[...] = m_new

    # ---- gather target logit for this vocab tile (local one-hot compare) ----
    hit = col_ids == (tgt - j * tile_v)
    t_ref[...] += jnp.sum(jnp.where(hit, logits, 0.0), axis=-1, keepdims=True)

    # ---- epilogue: per-row-tile partials, written once -----------------------
    @pl.when(j == n_vocab_tiles - 1)
    def _():
        lse = m_ref[...] + jnp.log(l_ref[...])             # (tile_n, 1)
        valid = tgt != pad_ix
        if n_rows % tile_n != 0:
            row_ids = lax.broadcasted_iota(jnp.int32, (tile_n, 1), 0) + i * tile_n
            valid = valid & (row_ids < n_rows)
        row_loss = jnp.where(valid, lse - t_ref[...], 0.0)
        tile_loss = jnp.sum(row_loss)                      # scalar f32
        tile_count = jnp.sum(valid.astype(jnp.int32))      # scalar i32
        loss_out_ref[...] = jnp.broadcast_to(tile_loss, loss_out_ref.shape)
        count_out_ref[...] = jnp.broadcast_to(tile_count, count_out_ref.shape)


def masked_cross_entropy_and_token_count(logits, targets, *, pad_ix=PAD_IX,
                                         tile_n=512, max_tile_v=2048):
    """
    logits:  (..., V) float (f32 or bf16 -- fed to the kernel in its own dtype)
    targets: (...)    int
    Returns (mean CE over non-pad tokens  [== ARModelBase.cross_entropy_loss],
             non-pad token count          [== ARModelBase.get_token_num(targets)])
    """
    V = logits.shape[-1]
    N = math.prod(logits.shape[:-1])

    # keep upstream dtype (bf16 stays bf16 on the wire; upcast happens in-kernel)
    logits2d = logits.reshape(N, V)
    targets2d = targets.reshape(N, 1).astype(jnp.int32)

    # --- tile sizing (legal + VMEM-safe on v5e/v6e/v7x) ------------------------
    if N <= tile_n:
        tile_n = N                                  # full dim: always legal
    else:
        tile_n = max(8, (tile_n // 8) * 8)          # multiple of 8 sublanes
    if V <= max_tile_v:
        tile_v = V                                  # full vocab in one block
    else:
        tile_v = max(128, (max_tile_v // 128) * 128)  # multiple of 128 lanes

    num_row_tiles = pl.cdiv(N, tile_n)
    num_vocab_tiles = pl.cdiv(V, tile_v)

    kernel = functools.partial(
        _masked_xent_kernel,
        pad_ix=pad_ix, n_rows=N, vocab=V, tile_n=tile_n, tile_v=tile_v)

    loss_part, count_part = pl.pallas_call(
        kernel,
        out_shape=(
            jax.ShapeDtypeStruct((num_row_tiles, 8, 128), jnp.float32),
            jax.ShapeDtypeStruct((num_row_tiles, 8, 128), jnp.int32),
        ),
        grid_spec=pltpu.PrefetchScalarGridSpec(
            num_scalar_prefetch=0,
            grid=(num_row_tiles, num_vocab_tiles),
            in_specs=[
                pl.BlockSpec((tile_n, tile_v), lambda i, j: (i, j)),
                pl.BlockSpec((tile_n, 1), lambda i, j: (i, 0)),
            ],
            out_specs=[
                pl.BlockSpec((1, 8, 128), lambda i, j: (i, 0, 0)),
                pl.BlockSpec((1, 8, 128), lambda i, j: (i, 0, 0)),
            ],
            scratch_shapes=[
                pltpu.VMEM((tile_n, 1), jnp.float32),   # running max  m
                pltpu.VMEM((tile_n, 1), jnp.float32),   # running sum  l
                pltpu.VMEM((tile_n, 1), jnp.float32),   # target logit t
            ],
        ),
        compiler_params=pltpu.CompilerParams(
            dimension_semantics=("parallel", "arbitrary"),
            vmem_limit_bytes=_VMEM_LIMIT_BYTES,
        ),
    )(logits2d, targets2d)

    # tiny final reduction of per-row-tile partials in XLA
    loss_sum = jnp.sum(loss_part[:, 0, 0])
    count = jnp.sum(count_part[:, 0, 0])
    # reduction='mean' over non-pad tokens; matches PyTorch (NaN if count == 0)
    mean_loss = loss_sum / count.astype(jnp.float32)
    return mean_loss, count


# -----------------------------------------------------------------------------
# Kernel 2: get_token_num(sentences) == sum(sentences != pad_ix)
# -----------------------------------------------------------------------------
def _token_count_kernel(x_ref, out_ref, *, pad_ix):
    i = pl.program_id(0)

    @pl.when(i == 0)
    def _():
        out_ref[...] = jnp.zeros_like(out_ref)

    m = (x_ref[...] != pad_ix).astype(jnp.int32)           # (tile_b, 8, 128)
    out_ref[...] += jnp.sum(m, axis=0)                     # lane-dense (8, 128) partials


def count_non_pad_tokens(sentences, *, pad_ix=PAD_IX, tile_blocks=128):
    """ARModelBase.get_token_num for an arbitrary-shaped int tensor of token ids."""
    flat = sentences.reshape(-1).astype(jnp.int32)
    n = flat.shape[0]
    lane = 128

    # round rows up so every grid block is full; pad with pad_ix (never counted)
    rows = max(8, ((pl.cdiv(n, lane) + 7) // 8) * 8)
    blocks = rows // 8
    tile_b = min(tile_blocks, blocks)
    blocks = pl.cdiv(blocks, tile_b) * tile_b
    padded = blocks * 8 * lane
    if padded != n:
        flat = jnp.pad(flat, (0, padded - n), constant_values=pad_ix)
    x3d = flat.reshape(blocks, 8, lane)

    out = pl.pallas_call(
        functools.partial(_token_count_kernel, pad_ix=pad_ix),
        out_shape=jax.ShapeDtypeStruct((8, 128), jnp.int32),
        grid_spec=pltpu.PrefetchScalarGridSpec(
            num_scalar_prefetch=0,
            grid=(blocks // tile_b,),
            in_specs=[pl.BlockSpec((tile_b, 8, lane), lambda i: (i, 0, 0))],
            out_specs=pl.BlockSpec((8, 128), lambda i: (0, 0)),
        ),
        compiler_params=pltpu.CompilerParams(
            dimension_semantics=("arbitrary",),
            vmem_limit_bytes=_VMEM_LIMIT_BYTES,
        ),
    )(x3d)
    return jnp.sum(out)


# TODO(synk): encoder / decoder / discriminator are externally-injected modules with
# unspecified architectures (and ARModelBase.forward raises NotImplementedError), so
# auto_reconst / cross_reconst / adversarial / decoder.generate cannot be lowered
# beyond the loss / token-count kernels above.


def _reference(logits, targets, pad_ix):
    V = logits.shape[-1]
    lse = jax.nn.logsumexp(logits.reshape(-1, V).astype(jnp.float32), axis=-1)
    tgt = targets.reshape(-1)
    tlog = jnp.take_along_axis(
        logits.reshape(-1, V).astype(jnp.float32), tgt[:, None], axis=-1)[:, 0]
    valid = tgt != pad_ix
    loss = jnp.sum(jnp.where(valid, lse - tlog, 0.0)) / jnp.sum(valid)
    return loss, jnp.sum(valid)


if __name__ == "__main__":
    key = jax.random.PRNGKey(0)
    k1, k2, k3, k4, k5, k6 = jax.random.split(key, 6)

    # --- test 1: small shapes consistent with decoded['logits'] (B, T, vocab) ---
    B, T, V = 2, 8, 32
    logits = jax.random.normal(k1, (B, T, V), dtype=jnp.float32)
    targets = jax.random.randint(k2, (B, T), 0, V, dtype=jnp.int32)
    targets = targets.at[:, -2:].set(PAD_IX)   # force some ignored positions

    loss, tok_count = masked_cross_entropy_and_token_count(logits, targets)
    loss = jax.block_until_ready(loss)
    tok_count = jax.block_until_ready(tok_count)

    ref_loss, ref_count = _reference(logits, targets, PAD_IX)
    assert jnp.allclose(loss, ref_loss, rtol=1e-4, atol=1e-4), (loss, ref_loss)
    assert int(tok_count) == int(ref_count), (tok_count, ref_count)

    # --- test 2: exercise multi-tile vocab + row/vocab tail masks ----------------
    B2, T2, V2 = 2, 5, 200          # N=10 (not a multiple of 8), V=200 (not of 128)
    logits2 = jax.random.normal(k3, (B2, T2, V2), dtype=jnp.float32)
    targets2 = jax.random.randint(k4, (B2, T2), 0, V2, dtype=jnp.int32)
    targets2 = targets2.at[:, -1:].set(PAD_IX)

    loss2, count2 = masked_cross_entropy_and_token_count(
        logits2, targets2, tile_n=8, max_tile_v=128)
    loss2 = jax.block_until_ready(loss2)
    count2 = jax.block_until_ready(count2)

    ref_loss2, ref_count2 = _reference(logits2, targets2, PAD_IX)
    assert jnp.allclose(loss2, ref_loss2, rtol=1e-4, atol=1e-4), (loss2, ref_loss2)
    assert int(count2) == int(ref_count2), (count2, ref_count2)

    # --- test 3: get_token_num on raw src/tgt sentences (forward's num_toks path) --
    src_sent = jax.random.randint(k5, (2, 9), 0, 50, dtype=jnp.int32)
    tgt_sent = jax.random.randint(k6, (2, 9), 0, 50, dtype=jnp.int32)
    src_sent = src_sent.at[:, -3:].set(PAD_IX)
    tgt_sent = tgt_sent.at[:, -1:].set(PAD_IX)

    num_toks = count_non_pad_tokens(src_sent) + count_non_pad_tokens(tgt_sent)
    num_toks = jax.block_until_ready(num_toks)
    ref_toks = jnp.sum(src_sent != PAD_IX) + jnp.sum(tgt_sent != PAD_IX)
    assert int(num_toks) == int(ref_toks), (num_toks, ref_toks)

    print("KERNEL_OK")
</pallas_src>

<mosaic_0001>
module attributes {stable_mosaic.version = 11 : i64} {
  func.func @_masked_xent_kernel(%arg0: i32, %arg1: i32, %arg2: memref<16x32xf32, #tpu.memory_space<vmem>>, %arg3: memref<16x1xi32, #tpu.memory_space<vmem>>, %arg4: memref<1x8x128xf32, #tpu.memory_space<vmem>>, %arg5: memref<1x8x128xi32, #tpu.memory_space<vmem>>, %arg6: memref<16x1xf32, #tpu.memory_space<vmem>>, %arg7: memref<16x1xf32, #tpu.memory_space<vmem>>, %arg8: memref<16x1xf32, #tpu.memory_space<vmem>>) attributes {dimension_semantics = [#tpu.dimension_semantics<parallel>, #tpu.dimension_semantics<arbitrary>], iteration_bounds = array<i64: 1, 1>, scalar_prefetch = 0 : i64, scratch_operands = 3 : i64, tpu.core_type = #tpu.core_type<tc>, window_params = [{transform_indices = @transform_0, window_bounds = array<i64: 16, 32>}, {transform_indices = @transform_1, window_bounds = array<i64: 16, 1>}, {transform_indices = @transform_2, window_bounds = array<i64: 1, 8, 128>}, {transform_indices = @transform_3, window_bounds = array<i64: 1, 8, 128>}]} {
    %c0_i32 = arith.constant 0 : i32
    %0 = arith.cmpi eq, %arg1, %c0_i32 : i32
    %1 = arith.extui %0 : i1 to i32
    %cst = arith.constant -1.000000e+30 : f32
    %c0_i32_0 = arith.constant 0 : i32
    %2 = arith.cmpi ne, %1, %c0_i32_0 : i32
    scf.if %2 {
      %37 = vector.broadcast %cst : f32 to vector<16x1xf32>
      %c0_22 = arith.constant 0 : index
      %c0_23 = arith.constant 0 : index
      %38 = vector.load %arg6[%c0_22, %c0_23] : memref<16x1xf32, #tpu.memory_space<vmem>>, vector<16x1xf32>
      tpu.vector_store %arg6[%c0_22, %c0_23], %37 {strides = array<i32>} : memref<16x1xf32, #tpu.memory_space<vmem>>, vector<16x1xf32>,
      %cst_24 = arith.constant 0.000000e+00 : f32
      %39 = vector.broadcast %cst_24 : f32 to vector<16x1xf32>
      %c0_25 = arith.constant 0 : index
      %c0_26 = arith.constant 0 : index
      %40 = vector.load %arg7[%c0_25, %c0_26] : memref<16x1xf32, #tpu.memory_space<vmem>>, vector<16x1xf32>
      tpu.vector_store %arg7[%c0_25, %c0_26], %39 {strides = array<i32>} : memref<16x1xf32, #tpu.memory_space<vmem>>, vector<16x1xf32>,
      %cst_27 = arith.constant 0.000000e+00 : f32
      %41 = vector.broadcast %cst_27 : f32 to vector<16x1xf32>
      %c0_28 = arith.constant 0 : index
      %c0_29 = arith.constant 0 : index
      %42 = vector.load %arg8[%c0_28, %c0_29] : memref<16x1xf32, #tpu.memory_space<vmem>>, vector<16x1xf32>
      tpu.vector_store %arg8[%c0_28, %c0_29], %41 {strides = array<i32>} : memref<16x1xf32, #tpu.memory_space<vmem>>, vector<16x1xf32>,
    } else {
    }
    %c0 = arith.constant 0 : index
    %c0_1 = arith.constant 0 : index
    %3 = vector.load %arg2[%c0, %c0_1] : memref<16x32xf32, #tpu.memory_space<vmem>>, vector<16x32xf32>
    %c0_2 = arith.constant 0 : index
    %c0_3 = arith.constant 0 : index
    %4 = vector.load %arg3[%c0_2, %c0_3] : memref<16x1xi32, #tpu.memory_space<vmem>>, vector<16x1xi32>
    %5 = tpu.iota {dimensions = array<i32: 1>} : vector<16x32xi32>
    %c0_4 = arith.constant 0 : index
    %c0_5 = arith.constant 0 : index
    %6 = vector.load %arg6[%c0_4, %c0_5] : memref<16x1xf32, #tpu.memory_space<vmem>>, vector<16x1xf32>
    %c0_6 = arith.constant 0 : index
    %c0_7 = arith.constant 0 : index
    %7 = vector.load %arg7[%c0_6, %c0_7] : memref<16x1xf32, #tpu.memory_space<vmem>>, vector<16x1xf32>
    %cst_8 = arith.constant dense<0xFF800000> : vector<16xf32>
    %8 = vector.multi_reduction <maximumf>, %3, %cst_8 [1] : vector<16x32xf32> to vector<16xf32>
    %9 = vector.shape_cast %8 : vector<16xf32> to vector<16x1xf32>
    %10 = arith.maximumf %6, %9 : vector<16x1xf32>
    %11 = vector.broadcast %10 : vector<16x1xf32> to vector<16x32xf32>
    %12 = arith.subf %3, %11 : vector<16x32xf32>
    %13 = math.exp %12 : vector<16x32xf32>
    %14 = arith.subf %6, %10 : vector<16x1xf32>
    %15 = math.exp %14 : vector<16x1xf32>
    %16 = arith.mulf %7, %15 : vector<16x1xf32>
    %cst_9 = arith.constant dense<0.000000e+00> : vector<16xf32>
    %17 = vector.multi_reduction <add>, %13, %cst_9 [1] : vector<16x32xf32> to vector<16xf32>
    %18 = vector.shape_cast %17 : vector<16xf32> to vector<16x1xf32>
    %19 = arith.addf %16, %18 : vector<16x1xf32>
    %c0_10 = arith.constant 0 : index
    %c0_11 = arith.constant 0 : index
    %20 = vector.load %arg7[%c0_10, %c0_11] : memref<16x1xf32, #tpu.memory_space<vmem>>, vector<16x1xf32>
    tpu.vector_store %arg7[%c0_10, %c0_11], %19 {strides = array<i32>} : memref<16x1xf32, #tpu.memory_space<vmem>>, vector<16x1xf32>,
    %c0_12 = arith.constant 0 : index
    %c0_13 = arith.constant 0 : index
    %21 = vector.load %arg6[%c0_12, %c0_13] : memref<16x1xf32, #tpu.memory_space<vmem>>, vector<16x1xf32>
    tpu.vector_store %arg6[%c0_12, %c0_13], %10 {strides = array<i32>} : memref<16x1xf32, #tpu.memory_space<vmem>>, vector<16x1xf32>,
    %c32_i32 = arith.constant 32 : i32
    %22 = arith.muli %arg1, %c32_i32 : i32
    %23 = vector.broadcast %22 : i32 to vector<16x1xi32>
    %24 = arith.subi %4, %23 : vector<16x1xi32>
    %25 = vector.broadcast %24 : vector<16x1xi32> to vector<16x32xi32>
    %26 = arith.cmpi eq, %5, %25 : vector<16x32xi32>
    %c0_14 = arith.constant 0 : index
    %c0_15 = arith.constant 0 : index
    %27 = vector.load %arg8[%c0_14, %c0_15] : memref<16x1xf32, #tpu.memory_space<vmem>>, vector<16x1xf32>
    %cst_16 = arith.constant 0.000000e+00 : f32
    %28 = vector.broadcast %cst_16 : f32 to vector<16x32xf32>
    %29 = arith.select %26, %3, %28 : vector<16x32xi1>, vector<16x32xf32>
    %cst_17 = arith.constant dense<0.000000e+00> : vector<16xf32>
    %30 = vector.multi_reduction <add>, %29, %cst_17 [1] : vector<16x32xf32> to vector<16xf32>
    %31 = vector.shape_cast %30 : vector<16xf32> to vector<16x1xf32>
    %32 = arith.addf %27, %31 : vector<16x1xf32>
    %c0_18 = arith.constant 0 : index
    %c0_19 = arith.constant 0 : index
    %33 = vector.load %arg8[%c0_18, %c0_19] : memref<16x1xf32, #tpu.memory_space<vmem>>, vector<16x1xf32>
    tpu.vector_store %arg8[%c0_18, %c0_19], %32 {strides = array<i32>} : memref<16x1xf32, #tpu.memory_space<vmem>>, vector<16x1xf32>,
    %c0_i32_20 = arith.constant 0 : i32
    %34 = arith.cmpi eq, %arg1, %c0_i32_20 : i32
    %35 = arith.extui %34 : i1 to i32
    %c0_i32_21 = arith.constant 0 : i32
    %36 = arith.cmpi ne, %35, %c0_i32_21 : i32
    scf.if %36 {
      %c0_22 = arith.constant 0 : index
      %c0_23 = arith.constant 0 : index
      %37 = vector.load %arg6[%c0_22, %c0_23] : memref<16x1xf32, #tpu.memory_space<vmem>>, vector<16x1xf32>
      %c0_24 = arith.constant 0 : index
      %c0_25 = arith.constant 0 : index
      %38 = vector.load %arg7[%c0_24, %c0_25] : memref<16x1xf32, #tpu.memory_space<vmem>>, vector<16x1xf32>
      %39 = math.log %38 : vector<16x1xf32>
      %40 = arith.addf %37, %39 : vector<16x1xf32>
      %c0_i32_26 = arith.constant 0 : i32
      %41 = vector.broadcast %c0_i32_26 : i32 to vector<16x1xi32>
      %42 = arith.cmpi ne, %4, %41 : vector<16x1xi32>
      %c0_27 = arith.constant 0 : index
      %c0_28 = arith.constant 0 : index
      %43 = vector.load %arg8[%c0_27, %c0_28] : memref<16x1xf32, #tpu.memory_space<vmem>>, vector<16x1xf32>
      %44 = arith.subf %40, %43 : vector<16x1xf32>
      %cst_29 = arith.constant 0.000000e+00 : f32
      %45 = vector.broadcast %cst_29 : f32 to vector<16x1xf32>
      %46 = arith.select %42, %44, %45 : vector<16x1xi1>, vector<16x1xf32>
      %47 = vector.shape_cast %46 : vector<16x1xf32> to vector<1x16x1xf32>
      %cst_30 = arith.constant dense<0.000000e+00> : vector<1xf32>
      %48 = vector.multi_reduction <add>, %47, %cst_30 [1, 2] : vector<1x16x1xf32> to vector<1xf32>
      %49 = vector.shape_cast %48 : vector<1xf32> to vector<1x1x1xf32>
      %50 = vector.extract %49[0, 0, 0] : f32 from vector<1x1x1xf32>
      %51 = arith.extui %42 : vector<16x1xi1> to vector<16x1xi32>
      %52 = vector.shape_cast %51 : vector<16x1xi32> to vector<1x16x1xi32>
      %cst_31 = arith.constant dense<0> : vector<1xi32>
      %53 = vector.multi_reduction <add>, %52, %cst_31 [1, 2] : vector<1x16x1xi32> to vector<1xi32>
      %54 = vector.shape_cast %53 : vector<1xi32> to vector<1x1x1xi32>
      %55 = vector.extract %54[0, 0, 0] : i32 from vector<1x1x1xi32>
      %56 = vector.broadcast %50 : f32 to vector<1x8x128xf32>
      %c0_32 = arith.constant 0 : index
      %c0_33 = arith.constant 0 : index
      %c0_34 = arith.constant 0 : index
      %57 = vector.load %arg4[%c0_32, %c0_33, %c0_34] : memref<1x8x128xf32, #tpu.memory_space<vmem>>, vector<1x8x128xf32>
      tpu.vector_store %arg4[%c0_32, %c0_33, %c0_34], %56 {strides = array<i32>} : memref<1x8x128xf32, #tpu.memory_space<vmem>>, vector<1x8x128xf32>,
      %58 = vector.broadcast %55 : i32 to vector<1x8x128xi32>
      %c0_35 = arith.constant 0 : index
      %c0_36 = arith.constant 0 : index
      %c0_37 = arith.constant 0 : index
      %59 = vector.load %arg5[%c0_35, %c0_36, %c0_37] : memref<1x8x128xi32, #tpu.memory_space<vmem>>, vector<1x8x128xi32>
      tpu.vector_store %arg5[%c0_35, %c0_36, %c0_37], %58 {strides = array<i32>} : memref<1x8x128xi32, #tpu.memory_space<vmem>>, vector<1x8x128xi32>,
    } else {
    }
    return
  }
  func.func @transform_0(%arg0: i32, %arg1: i32) -> (i32, i32) {
    %c0_i32 = arith.constant 0 : i32
    return %arg0, %arg1 : i32, i32
  }
  func.func @transform_1(%arg0: i32, %arg1: i32) -> (i32, i32) {
    %c0_i32 = arith.constant 0 : i32
    %c0_i32_0 = arith.constant 0 : i32
    return %arg0, %c0_i32 : i32, i32
  }
  func.func @transform_2(%arg0: i32, %arg1: i32) -> (i32, i32, i32) {
    %c0_i32 = arith.constant 0 : i32
    %c0_i32_0 = arith.constant 0 : i32
    %c0_i32_1 = arith.constant 0 : i32
    return %arg0, %c0_i32, %c0_i32_0 : i32, i32, i32
  }
  func.func @transform_3(%arg0: i32, %arg1: i32) -> (i32, i32, i32) {
    %c0_i32 = arith.constant 0 : i32
    %c0_i32_0 = arith.constant 0 : i32
    %c0_i32_1 = arith.constant 0 : i32
    return %arg0, %c0_i32, %c0_i32_0 : i32, i32, i32
  }
}

</mosaic_0001>

<bundles_post_ra>
// kernel: tpu_custom_call.1
= control target key start
LH: loop header
LB: loop body
LE: loop exit
PB: predicated region body
PF: predicated region fallthrough
CT: control target
= control target key end

     0   :  { %9 = vsyncpa [#allocation6], 0  ;;  %vm36_vm0 = vcmask 261120   ;;  %s358_s0 = inlined_call_operand.vmem [shape: f32[16,32], index: 0, kind: input, shape index: {}]   ;;  %s359_s1 = inlined_call_operand.vmem [shape: s32[16,1], index: 1, kind: input, shape index: {}]   ;;  %s360_s2 = inlined_call_operand.hbm [shape: f32[1,8,128], index: 2, kind: output, shape index: {0}]   ;;  %s361_s3 = inlined_call_operand.hbm [shape: s32[1,8,128], index: 3, kind: output, shape index: {1}]  }
   0x1   :  { %v26_v0 = vld [vmem:[%s358_s0] sm:$0xff] }
   0x2   :  { %10 = vsyncpa [#allocation8], 0  ;;  %v37_v1 = vsel %vm36_vm0, %v26_v0, -inf  ;;  %v27_v2 = vld [vmem:[%s358_s0 + $0x8] sm:$0xff]  ;;  %vm19_vm1 = vcmask 7168   ;;  %v278_v5 = vmov 0   ;;  %v30_v19 = vlaneseq }
   0x3   :  { %38 = vmax.xlane.f32.xlu0 %v37_v1  ;;  %v40_v3 = vsel %vm36_vm0, %v27_v2, -inf  ;;  %v277_v4 = vmov -1e+30   ;;  %210 = vset.pattern.permute.xlu1 %v278_v5  ;;  %v279_v6 = vmov 0.0   ;;  %v319_v7 = vld [vmem:[%s359_s1] sm:$0xff]  ;;  %v324_v8 = vld [vmem:[%s359_s1 + $0x8] sm:$0xff] }
   0x4   :  { %20 = vst.msk [vmem:[#allocation2] sm:$0xff] %vm19_vm1, %v277_v4  ;;  %211 = vset.pattern.permute.xlu2 %v278_v5  ;;  %212 = vset.pattern.permute.xlu0 %v278_v5  ;;  %vm121_vm2 = vcmp.ne.s32.totalorder %v319_v7, 0  ;;  %vm122_vm3 = vcmp.ne.s32.totalorder %v324_v8, 0  ;;  %v31_v20 = vand.u32 127, %v30_v19  ;;  %s280_s1 = smov [#allocation5]   ;;  %s176_s22 = sshll.u32 %s360_s2, 4  ;;  %s177_s22 = int_to_ptr.hbm [resolvable:$true] %s176_s22 }
   0x5   :  { %21 = vst.msk [vmem:[#allocation2 + $0x8] sm:$0xff] %vm19_vm1, %v277_v4  ;;  %87 = vperm.xlu2 %211, %v319_v7   ;;  %v141_v9 = vsel %vm121_vm2, 1, %v278_v5  ;;  %v142_v10 = vsel %vm122_vm3, 1, %v278_v5  ;;  %s174_s19 = sshll.u32 %s280_s1, 4  ;;  %s281_s23 = smov [#allocation7]   ;;  %s175_s19 = int_to_ptr.vmem [resolvable:$true] %s174_s19 }
   0x6   :  { %22 = vst.msk [vmem:[#allocation3] sm:$0xff] %vm19_vm1, %v279_v6  ;;  %v143_v37 = vsel %vm19_vm1, %v141_v9, 0  ;;  %v144_v38 = vsel %vm19_vm1, %v142_v10, 0  ;;  %s185_s24 = sshll.u32 %s281_s23, 4  ;;  %s187_s27 = sshll.u32 %s361_s3, 4  ;;  %s186_s24 = int_to_ptr.vmem [resolvable:$true] %s185_s24  ;;  %s188_s27 = int_to_ptr.hbm [resolvable:$true] %s187_s27 }
   0x7   :  { %23 = vst.msk [vmem:[#allocation3 + $0x8] sm:$0xff] %vm19_vm1, %v279_v6  ;;  %v145_v39 = vadd.s32 %v144_v38, %v143_v37 }
   0x8   :  { %24 = vst.msk [vmem:[#allocation4] sm:$0xff] %vm19_vm1, %v279_v6 }
   0x9   :  { %25 = vst.msk [vmem:[#allocation4 + $0x8] sm:$0xff] %vm19_vm1, %v279_v6  ;;  %v147_v40 = vshrl.u32 %v145_v39, 16  ;;  %v146_v45 = vand.u32 65535, %v145_v39 }
   0xb   :  { %41 = vmax.xlane.f32.xlu0 %v40_v3  ;;  %v32_v11 = vld [vmem:[#allocation2] sm:$0xff]  ;;  %v149_v41 = vcvt.s32.f32 %v147_v40  ;;  %v148_v46 = vcvt.s32.f32 %v146_v45 }
   0xc   :  { %v33_v15 = vld [vmem:[#allocation2 + $0x8] sm:$0xff] }
   0xd   :  { %90 = vperm.xlu2 %211, %v324_v8   ;;  %v34_v50 = vld [vmem:[#allocation3] sm:$0xff] }
   0xe   :  { %v35_v55 = vld [vmem:[#allocation3 + $0x8] sm:$0xff] }
   0xf   :  { %v94_v43 = vld [vmem:[#allocation4] sm:$0xff] }
  0x10   :  { %v95_v56 = vld [vmem:[#allocation4 + $0x8] sm:$0xff] }
  0x5f   :  { %v88_v21 = vpop.permute.xlu2 %87 }
  0x60   :  { %vm92_vm4 = vcmp.eq.s32.totalorder %v31_v20, %v88_v21 }
  0x61   :  { %v96_v22 = vsel %vm92_vm4, %v26_v0, 0.0 }
  0x62   :  { %v98_v23 = vsel %vm36_vm0, %v96_v22, 0.0 }
  0x63   :  { %99 = vadd.xlane.f32.xlu2 %v98_v23 }
  0x67   :  { %v91_v29 = vpop.permute.xlu2 %90 }
  0x68   :  { %vm93_vm5 = vcmp.eq.s32.totalorder %v31_v20, %v91_v29 }
  0x69   :  { %v97_v33 = vsel %vm93_vm5, %v27_v2, 0.0 }
  0x6a   :  { %v101_v34 = vsel %vm36_vm0, %v97_v33, 0.0 }
  0x76   :  { %v39_v12 = vpop.xlane.xlu0 %38 }
  0x77   :  { %v43_v13 = vmax.f32 %v32_v11, %v39_v12 }
  0x79   :  { %v61_v14 = vsub.f32 %v32_v11, %v43_v13  ;;  %80 = vst.msk [vmem:[#allocation2] sm:$0xff] %vm19_vm1, %v43_v13  ;;  %47 = vperm.xlu1 %210, %v43_v13  }
  0x7b   :  { %v63_v47 = vmul.f32 1.442695, %v61_v14 }
  0x7e   :  { %v42_v16 = vpop.xlane.xlu0 %41 }
  0x7f   :  { %v44_v17 = vmax.f32 %v33_v15, %v42_v16 }
  0x81   :  { %v62_v18 = vsub.f32 %v33_v15, %v44_v17  ;;  %81 = vst.msk [vmem:[#allocation2 + $0x8] sm:$0xff] %vm19_vm1, %v44_v17  ;;  %52 = vperm.xlu1 %210, %v44_v17  }
  0x83   :  { %v65_v48 = vmul.f32 1.442695, %v62_v18 }
  0x88   :  { %v112_v10 = vld [vmem:[#allocation2 + $0x8] sm:$0xff] }
  0xd6   :  { %v100_v42 = vpop.xlane.xlu2 %99 }
  0xd7   :  { %v104_v44 = vadd.f32 %v100_v42, %v94_v43 }
  0xd9   :  { %106 = vst.msk [vmem:[#allocation4] sm:$0xff] %vm19_vm1, %v104_v44 }
  0xe0   :  { %v123_v4 = vld [vmem:[#allocation4] sm:$0xff] }
  0xeb   :  { %v48_v24 = vpop.permute.xlu1 %47 }
  0xec   :  { %v55_v25 = vsub.f32 %v26_v0, %v48_v24 }
  0xee   :  { %v57_v26 = vmul.f32 1.442695, %v55_v25 }
  0xf0   :  { %213 = vpow2.f32 %v57_v26 }
  0xf3   :  { %v53_v27 = vpop.permute.xlu1 %52 }
  0xf4   :  { %v56_v28 = vsub.f32 %v27_v2, %v53_v27  ;;  %v111_v2 = vld [vmem:[#allocation2] sm:$0xff] }
  0xf6   :  { %v214_v30 = vpop.eup %213  ;;  %v59_v31 = vmul.f32 1.442695, %v56_v28 }
  0xf7   :  { %v69_v32 = vsel %vm36_vm0, %v214_v30, 0.0 }
  0xf8   :  { %215 = vpow2.f32 %v59_v31  ;;  %70 = vadd.xlane.f32.xlu0 %v69_v32 }
  0xf9   :  { %217 = vpow2.f32 %v63_v47 }
  0xfa   :  { %219 = vpow2.f32 %v65_v48 }
  0xfe   :  { %v216_v35 = vpop.eup %215 }
  0xff   :  { %v72_v36 = vsel %vm36_vm0, %v216_v35, 0.0  ;;  %v218_v49 = vpop.eup %217 }
 0x100   :  { %73 = vadd.xlane.f32.xlu1 %v72_v36  ;;  %102 = vadd.xlane.f32.xlu0 %v101_v34  ;;  %v67_v51 = vmul.f32 %v218_v49, %v34_v50  ;;  %v220_v54 = vpop.eup %219 }
 0x101   :  { %v68_v57 = vmul.f32 %v220_v54, %v35_v55 }
 0x108   :  { %152 = vadd.xlane.f32.xlu0 %v149_v41 }
 0x110   :  { %150 = vadd.xlane.f32.xlu0 %v148_v46 }
 0x16b   :  { %v71_v52 = vpop.xlane.xlu0 %70 }
 0x16c   :  { %v75_v53 = vadd.f32 %v71_v52, %v67_v51 }
 0x16e   :  { %78 = vst.msk [vmem:[#allocation3] sm:$0xff] %vm19_vm1, %v75_v53 }
 0x173   :  { %v74_v58 = vpop.xlane.xlu1 %73  ;;  %v103_v59 = vpop.xlane.xlu0 %102 }
 0x174   :  { %v76_v60 = vadd.f32 %v74_v58, %v68_v57  ;;  %v105_v61 = vadd.f32 %v103_v59, %v95_v56 }
 0x175   :  { %v113_v62 = vld [vmem:[#allocation3] sm:$0xff] }
 0x176   :  { %79 = vst.msk [vmem:[#allocation3 + $0x8] sm:$0xff] %vm19_vm1, %v76_v60  ;;  %221 = vlog2.f32 %v113_v62 }
 0x177   :  { %107 = vst.msk [vmem:[#allocation4 + $0x8] sm:$0xff] %vm19_vm1, %v105_v61 }
 0x17b   :  { %v153_v19 = vpop.xlane.xlu0 %152 }
 0x17c   :  { %v222_v63 = vpop.eup %221  ;;  %v155_v20 = vcvt.f32.s32 %v153_v19 }
 0x17d   :  { %v114_v0 = vld [vmem:[#allocation3 + $0x8] sm:$0xff]  ;;  %v116_v1 = vmul.f32 0.6931472, %v222_v63 }
 0x17e   :  { %223 = vlog2.f32 %v114_v0  ;;  %v124_v12 = vld [vmem:[#allocation4 + $0x8] sm:$0xff]  ;;  %v156_v22 = vshll.u32 %v155_v20, 16 }
 0x17f   :  { %v119_v3 = vadd.f32 %v116_v1, %v111_v2 }
 0x181   :  { %v125_v9 = vsub.f32 %v119_v3, %v123_v4 }
 0x183   :  { %v127_v14 = vsel %vm121_vm2, %v125_v9, 0.0  ;;  %v151_v21 = vpop.xlane.xlu0 %150 }
 0x184   :  { %v224_v5 = vpop.eup %223  ;;  %v129_v16 = vsel %vm19_vm1, %v127_v14, 0.0  ;;  %v154_v23 = vcvt.f32.s32 %v151_v21 }
 0x185   :  { %v118_v6 = vmul.f32 0.6931472, %v224_v5 }
 0x186   :  { %v157_v24 = vadd.s32 %v156_v22, %v154_v23 }
 0x187   :  { %v120_v11 = vadd.f32 %v118_v6, %v112_v10 }
 0x188   :  { %v158_v25 = vrot.slane %v157_v24, 4 }
 0x189   :  { %v126_v13 = vsub.f32 %v120_v11, %v124_v12 }
 0x18a   :  { %v159_v26 = vadd.s32 %v158_v25, %v157_v24 }
 0x18b   :  { %v128_v15 = vsel %vm122_vm3, %v126_v13, 0.0 }
 0x18c   :  { %v130_v17 = vsel %vm19_vm1, %v128_v15, 0.0  ;;  %v160_v7 = vrot.slane %v159_v26, 2 }
 0x18d   :  { %v131_v18 = vadd.f32 %v130_v17, %v129_v16 }
 0x18e   :  { %v161_v8 = vadd.s32 %v160_v7, %v159_v26 }
 0x18f   :  { %132 = vadd.xlane.f32.xlu0 %v131_v18 }
 0x190   :  { %v162_v32 = vrot.slane %v161_v8, 1 }
 0x192   :  { %v163_v35 = vadd.s32 %v162_v32, %v161_v8 }
 0x202   :  { %v133_v27 = vpop.xlane.xlu0 %132 }
 0x203   :  { %v134_v28 = vrot.slane %v133_v27, 4 }
 0x205   :  { %v135_v29 = vadd.f32 %v134_v28, %v133_v27 }
 0x207   :  { %v136_v30 = vrot.slane %v135_v29, 2 }
 0x209   :  { %v137_v31 = vadd.f32 %v136_v30, %v135_v29 }
 0x20b   :  { %v138_v33 = vrot.slane %v137_v31, 1 }
 0x20d   :  { %v139_v34 = vadd.f32 %v138_v33, %v137_v31 }
 0x20f   :  { %201 = vpush %v139_v34 }
 0x210   :  { %203 = vpush %v163_v35 }
 0x240   :  { %s202_s28 = spop %201 }
 0x241   :  { %v165_v36 = vstv %s202_s28  ;;  %s204_s29 = spop %203 }
 0x242   :  { %166 = vst [vmem:[#allocation5] sm:$0xff] %v165_v36  ;;  %v167_v37 = vstv %s204_s29 }
 0x243   :  { %168 = vst [vmem:[#allocation7] sm:$0xff] %v167_v37  ;;  %179 = dma.vmem_to_hbm [thread:$0]  %s175_s19, 128, %s177_s22, [#allocation6]  }
 0x244   :  { %190 = dma.vmem_to_hbm [thread:$0]  %s186_s24, 128, %s188_s27, [#allocation8]  }
 0x245   :  { %273 = dma.done.wait [#allocation6], 128  }
 0x246   :  { %274 = vsyncadd [#allocation6], 4294967168 }
 0x247   :  { %275 = dma.done.wait [#allocation8], 128  }
 0x248   :  { %276 = vsyncadd [#allocation8], 4294967168 }
 0x249   :  { %199 = vsyncpa [#allocation6], 1 }
 0x24a   :  { %200 = vsyncpa [#allocation8], 1 }

</bundles_post_ra>
